<compile_context>
chip_gen: v7x
topology: tpu7x:2x2x1
jax: 0.10.0
libtpu: 0.0.40
codegen_flags: <defaults>
</compile_context>

<pallas_src>
import functools

import jax
import jax.numpy as jnp
from jax import lax
from jax.experimental import pallas as pl
from jax.experimental.pallas import tpu as pltpu


def _joints_huber_kernel(*refs, use_weight, weight_resident, tR, tL):
    """Per-tile kernel.

    pred/gt tiles are (tR, tL) in native dtype; writes an (8, 128) f32 partial
    holding the tile's sum of 2*Huber(d, delta=1). The 0.5 factors are folded
    into one final scale applied outside the kernel.
    """
    if use_weight:
        pred_ref, gt_ref, w_ref, out_ref = refs
    else:
        pred_ref, gt_ref, out_ref = refs
        w_ref = None

    n_slabs = tR // 8
    lane_dense = (tL % 128 == 0)
    if use_weight and weight_resident:
        row_base = pl.program_id(0) * tR     # offset into the resident weight
    else:
        row_base = 0

    def slab(i, acc):
        start = pl.multiple_of(i * 8, 8)
        # Upcast in-kernel: HBM traffic stays at native dtype width.
        p = pred_ref[pl.ds(start, 8), :].astype(jnp.float32)      # (8, tL)
        g = gt_ref[pl.ds(start, 8), :].astype(jnp.float32)
        d = p - g
        if use_weight:
            wstart = pl.multiple_of(row_base + start, 8)
            w = w_ref[pl.ds(wstart, 8), :].astype(jnp.float32)    # (8, 1)
            d = d * w
        ad = jnp.abs(d)
        # Branch-free 2*Huber(delta=1): m = min(|d|,1) -> m*(2|d|-m)
        #   |d| < 1 : d*d ;  |d| >= 1 : 2|d| - 1
        m = jnp.minimum(ad, 1.0)
        h2 = m * (ad + ad - m)
        return acc + h2                                           # VALU adds

    init = jnp.zeros((8, tL), jnp.float32)
    acc = lax.fori_loop(0, n_slabs, slab, init,
                        unroll=(n_slabs if n_slabs <= 16 else 8))

    if lane_dense:
        # Fold lane groups of 128 with pure vreg adds (no XLU, no relayout):
        # static, tile-aligned (8,128) slices of the accumulator.
        part = acc[:, 0:128]
        for kk in range(1, tL // 128):
            part = part + acc[:, kk * 128:(kk + 1) * 128]
    else:
        # Fallback for HW not a multiple of 128: one cross-lane reduce, result
        # placed in lane 0 of the (8, 128) partial slab.
        s = jnp.sum(acc, axis=-1, keepdims=True)                  # (8, 1)
        lane = lax.broadcasted_iota(jnp.int32, (8, 128), 1)
        part = jnp.where(lane == 0, s, 0.0)

    out_ref[0, 0] = part                                          # (8, 128)


def _pick_lane_tile(HW, itemsize, block_bytes):
    """Lane (HW) tile: full HW if it fits / isn't 128-divisible, else the
    largest multiple-of-128 divisor whose 8-row slab fits block_bytes."""
    if HW % 128 != 0 or 8 * HW * itemsize <= block_bytes:
        # TODO(synk): if HW is huge AND not a multiple of 128, pad the lane
        # axis to a multiple of 128 instead of taking the whole-HW tile.
        return HW
    cands = [d for d in range(128, HW, 128)
             if HW % d == 0 and 8 * d * itemsize <= block_bytes]
    return max(cands) if cands else 128


def _pick_row_tile(R_pad, row_bytes, block_bytes):
    """Largest multiple-of-8 divisor of R_pad that fits block_bytes, preferring
    >= 2 tiles so the grid can pipeline / shard across TensorCores."""
    cands = [d for d in range(8, R_pad + 1, 8) if R_pad % d == 0]
    fits = [d for d in cands if d * row_bytes <= block_bytes]
    if not fits:
        return 8
    multi = [d for d in fits if R_pad // d >= 2]
    return max(multi) if multi else max(fits)


def joints_huber_loss(output, target, target_weight=None, *,
                      use_target_weight=True, block_bytes=None):
    """output, target: (B, J, H, W); target_weight: (B, J, 1). Returns f32 scalar."""
    B, J, H, W = output.shape
    HW = H * W
    R = B * J

    try:
        vmem_cap = int(pltpu.get_tpu_info().vmem_capacity_bytes)
    except Exception:
        vmem_cap = 64 << 20
    if block_bytes is None:
        # Generation-aware: smaller blocks on 64-MiB-VMEM parts (v7x).
        block_bytes = (4 << 20) if vmem_cap <= (64 << 20) else (6 << 20)

    # Free, layout-preserving reshapes (no transpose, no dtype change).
    pred = output.reshape(R, HW)
    gt = target.reshape(R, HW)

    # Pad B*J up to a multiple of 8 so the tiled fast path is unconditional.
    # Padded rows have pred == gt == 0 -> d == 0 -> zero Huber contribution.
    R_pad = ((R + 7) // 8) * 8
    if R_pad != R:
        pad = R_pad - R
        pred = jnp.pad(pred, ((0, pad), (0, 0)))
        gt = jnp.pad(gt, ((0, pad), (0, 0)))

    itemsize = max(jnp.dtype(pred.dtype).itemsize, jnp.dtype(gt.dtype).itemsize)
    tL = _pick_lane_tile(HW, itemsize, block_bytes)
    tR = _pick_row_tile(R_pad, tL * itemsize, block_bytes)
    nR = R_pad // tR
    nL = HW // tL

    in_specs = [pl.BlockSpec((tR, tL), lambda r, l: (r, l)),
                pl.BlockSpec((tR, tL), lambda r, l: (r, l))]
    args = [pred, gt]

    weight_resident = False
    if use_target_weight:
        assert target_weight is not None
        w = target_weight.reshape(R, 1)
        if R_pad != R:
            w = jnp.pad(w, ((0, R_pad - R), (0, 0)))
        # Keep the small per-row weight resident in VMEM (constant index map
        # -> one DMA total instead of one tiny DMA per grid step), unless R is
        # unrealistically huge.
        weight_resident = (R_pad * 128 * 4) <= (4 << 20)
        if weight_resident:
            in_specs.append(pl.BlockSpec((R_pad, 1), lambda r, l: (0, 0)))
        else:
            in_specs.append(pl.BlockSpec((tR, 1), lambda r, l: (r, 0)))
        args.append(w)

    # VMEM budget: 2 big inputs x 2 pipeline buffers + weight + output +
    # internal scratch headroom; capped below physical VMEM.
    tile_bytes = tR * tL * itemsize
    w_vmem = ((R_pad if weight_resident else tR) * 128 * 4) if use_target_weight else 0
    need = 4 * tile_bytes + 2 * w_vmem + (4 << 20)
    vmem_limit = min(max(32 << 20, need), int(vmem_cap * 0.9))

    kernel = functools.partial(_joints_huber_kernel,
                               use_weight=use_target_weight,
                               weight_resident=weight_resident,
                               tR=tR, tL=tL)

    cost = pl.CostEstimate(
        flops=10 * R_pad * HW,
        transcendentals=0,
        bytes_accessed=(2 * R_pad * HW * itemsize
                        + (R_pad * 4 if use_target_weight else 0)
                        + nR * nL * 8 * 128 * 4),
    )

    partials = pl.pallas_call(
        kernel,
        out_shape=jax.ShapeDtypeStruct((nR, nL, 8, 128), jnp.float32),
        grid_spec=pltpu.PrefetchScalarGridSpec(
            num_scalar_prefetch=0,
            grid=(nR, nL),
            in_specs=in_specs,
            out_specs=pl.BlockSpec((1, 1, 8, 128), lambda r, l: (r, l, 0, 0)),
        ),
        compiler_params=pltpu.CompilerParams(
            dimension_semantics=("parallel", "parallel"),
            vmem_limit_bytes=int(vmem_limit)),
        cost_estimate=cost,
    )(*args)

    # partials hold sums of 2*Huber(delta=1);
    # loss = (1/J) * sum_j 0.5 * mean(Huber) = 0.25/(J*B*HW) * sum(2*Huber).
    # Scale uses the ORIGINAL (unpadded) B, J, HW.
    return jnp.sum(partials) * (0.25 / float(J * B * HW))


def _reference(output, target, target_weight, use_target_weight):
    # Pure-JAX mirror of the PyTorch module (computed in f32).
    output = output.astype(jnp.float32)
    target = target.astype(jnp.float32)
    B, J, H, W = output.shape
    pred = output.reshape(B, J, -1)
    gt = target.reshape(B, J, -1)
    loss = 0.0
    for idx in range(J):
        p = pred[:, idx, :]
        g = gt[:, idx, :]
        if use_target_weight:
            w = target_weight.astype(jnp.float32)[:, idx]   # (B, 1)
            p = p * w
            g = g * w
        d = p - g
        ad = jnp.abs(d)
        h = jnp.where(ad < 1.0, 0.5 * d * d, ad - 0.5)
        loss = loss + 0.5 * jnp.mean(h)
    return loss / J


if __name__ == "__main__":
    key = jax.random.PRNGKey(0)
    ks = jax.random.split(key, 15)

    # Case 1: f32 heatmaps, weighted + unweighted (single tile).
    B, J, H, W = 2, 4, 16, 16
    out1 = jax.random.normal(ks[0], (B, J, H, W), dtype=jnp.float32)
    tgt1 = jax.random.normal(ks[1], (B, J, H, W), dtype=jnp.float32)
    w1 = jax.random.uniform(ks[2], (B, J, 1), dtype=jnp.float32)
    lw = jax.block_until_ready(
        joints_huber_loss(out1, tgt1, w1, use_target_weight=True))
    rw = _reference(out1, tgt1, w1, True)
    assert jnp.allclose(lw, rw, rtol=1e-5, atol=1e-6), (lw, rw)
    lu = jax.block_until_ready(
        joints_huber_loss(out1, tgt1, None, use_target_weight=False))
    ru = _reference(out1, tgt1, None, False)
    assert jnp.allclose(lu, ru, rtol=1e-5, atol=1e-6), (lu, ru)

    # Case 2: bf16 heatmaps (native-dtype streaming), forced multi-row-tile grid.
    B, J, H, W = 4, 8, 16, 16
    out2 = jax.random.normal(ks[3], (B, J, H, W), dtype=jnp.bfloat16)
    tgt2 = jax.random.normal(ks[4], (B, J, H, W), dtype=jnp.bfloat16)
    w2 = jax.random.uniform(ks[5], (B, J, 1), dtype=jnp.float32)
    l2 = jax.block_until_ready(
        joints_huber_loss(out2, tgt2, w2, use_target_weight=True,
                          block_bytes=4096))   # -> 4 row tiles of 8
    r2 = _reference(out2, tgt2, w2, True)
    assert jnp.allclose(l2, r2, rtol=1e-4, atol=1e-5), (l2, r2)

    # Case 3: B*J not a multiple of 8 -> zero-row padding, still tiled.
    B, J, H, W = 3, 5, 16, 16
    out3 = jax.random.normal(ks[6], (B, J, H, W), dtype=jnp.float32)
    tgt3 = jax.random.normal(ks[7], (B, J, H, W), dtype=jnp.float32)
    w3 = jax.random.uniform(ks[8], (B, J, 1), dtype=jnp.float32)
    l3 = jax.block_until_ready(
        joints_huber_loss(out3, tgt3, w3, use_target_weight=True))
    r3 = _reference(out3, tgt3, w3, True)
    assert jnp.allclose(l3, r3, rtol=1e-5, atol=1e-6), (l3, r3)

    # Case 4: lane tiling engaged (2-D grid) via a tiny block budget.
    B, J, H, W = 2, 4, 32, 32
    out4 = jax.random.normal(ks[9], (B, J, H, W), dtype=jnp.float32)
    tgt4 = jax.random.normal(ks[10], (B, J, H, W), dtype=jnp.float32)
    w4 = jax.random.uniform(ks[11], (B, J, 1), dtype=jnp.float32)
    l4 = jax.block_until_ready(
        joints_huber_loss(out4, tgt4, w4, use_target_weight=True,
                          block_bytes=8192))   # -> tL=256, nL=4
    r4 = _reference(out4, tgt4, w4, True)
    assert jnp.allclose(l4, r4, rtol=1e-5, atol=1e-6), (l4, r4)

    # Case 5: HW not a multiple of 128 -> non-lane-dense fallback partial.
    B, J, H, W = 2, 3, 10, 10
    out5 = jax.random.normal(ks[12], (B, J, H, W), dtype=jnp.float32)
    tgt5 = jax.random.normal(ks[13], (B, J, H, W), dtype=jnp.float32)
    w5 = jax.random.uniform(ks[14], (B, J, 1), dtype=jnp.float32)
    l5 = jax.block_until_ready(
        joints_huber_loss(out5, tgt5, w5, use_target_weight=True))
    r5 = _reference(out5, tgt5, w5, True)
    assert jnp.allclose(l5, r5, rtol=1e-5, atol=1e-6), (l5, r5)

    print("KERNEL_OK")
</pallas_src>

<mosaic_0001>
module attributes {stable_mosaic.version = 11 : i64} {
  func.func @_joints_huber_kernel(%arg0: i32, %arg1: i32, %arg2: memref<8x256xf32, #tpu.memory_space<vmem>>, %arg3: memref<8x256xf32, #tpu.memory_space<vmem>>, %arg4: memref<8x1xf32, #tpu.memory_space<vmem>>, %arg5: memref<1x1x8x128xf32, #tpu.memory_space<vmem>>) attributes {dimension_semantics = [#tpu.dimension_semantics<parallel>, #tpu.dimension_semantics<parallel>], iteration_bounds = array<i64: 1, 1>, scalar_prefetch = 0 : i64, scratch_operands = 0 : i64, tpu.core_type = #tpu.core_type<tc>, window_params = [{transform_indices = @transform_0, window_bounds = array<i64: 8, 256>}, {transform_indices = @transform_1, window_bounds = array<i64: 8, 256>}, {pipeline_mode = #tpu.pipeline_mode<synchronous>, transform_indices = @transform_2, window_bounds = array<i64: 8, 1>}, {transform_indices = @transform_3, window_bounds = array<i64: 1, 1, 8, 128>}]} {
    %c8_i32 = arith.constant 8 : i32
    %0 = arith.muli %arg0, %c8_i32 : i32
    %cst = arith.constant 0.000000e+00 : f32
    %1 = vector.broadcast %cst : f32 to vector<8x256xf32>
    %c0_i32 = arith.constant 0 : i32
    %c8_i32_0 = arith.constant 8 : i32
    %2 = arith.muli %c0_i32, %c8_i32_0 : i32
    %3 = tpu.assume_multiple %2, 8 : i32
    %4 = arith.index_cast %3 : i32 to index
    %c0 = arith.constant 0 : index
    %5 = vector.load %arg2[%4, %c0] : memref<8x256xf32, #tpu.memory_space<vmem>>, vector<8x256xf32>
    %6 = arith.index_cast %3 : i32 to index
    %c0_1 = arith.constant 0 : index
    %7 = vector.load %arg3[%6, %c0_1] : memref<8x256xf32, #tpu.memory_space<vmem>>, vector<8x256xf32>
    %8 = arith.subf %5, %7 : vector<8x256xf32>
    %9 = arith.addi %0, %3 : i32
    %10 = tpu.assume_multiple %9, 8 : i32
    %11 = arith.index_cast %10 : i32 to index
    %c0_2 = arith.constant 0 : index
    %12 = vector.load %arg4[%11, %c0_2] : memref<8x1xf32, #tpu.memory_space<vmem>>, vector<8x1xf32>
    %13 = vector.broadcast %12 : vector<8x1xf32> to vector<8x256xf32>
    %14 = arith.mulf %8, %13 : vector<8x256xf32>
    %15 = math.absf %14 : vector<8x256xf32>
    %cst_3 = arith.constant 1.000000e+00 : f32
    %16 = vector.broadcast %cst_3 : f32 to vector<8x256xf32>
    %17 = arith.minimumf %15, %16 : vector<8x256xf32>
    %18 = arith.addf %15, %15 : vector<8x256xf32>
    %19 = arith.subf %18, %17 : vector<8x256xf32>
    %20 = arith.mulf %17, %19 : vector<8x256xf32>
    %21 = arith.addf %1, %20 : vector<8x256xf32>
    %c1_i32 = arith.constant 1 : i32
    %22 = vector.extract_strided_slice %21 {offsets = [0, 0], sizes = [8, 128], strides = [1, 1]} : vector<8x256xf32> to vector<8x128xf32>
    %23 = vector.extract_strided_slice %21 {offsets = [0, 128], sizes = [8, 128], strides = [1, 1]} : vector<8x256xf32> to vector<8x128xf32>
    %24 = arith.addf %22, %23 : vector<8x128xf32>
    %c0_4 = arith.constant 0 : index
    %c0_5 = arith.constant 0 : index
    %c0_6 = arith.constant 0 : index
    %c0_7 = arith.constant 0 : index
    %25 = vector.load %arg5[%c0_4, %c0_5, %c0_6, %c0_7] : memref<1x1x8x128xf32, #tpu.memory_space<vmem>>, vector<1x1x8x128xf32>
    %26 = vector.shape_cast %25 : vector<1x1x8x128xf32> to vector<8x128xf32>
    %27 = vector.shape_cast %24 : vector<8x128xf32> to vector<1x1x8x128xf32>
    tpu.vector_store %arg5[%c0_4, %c0_5, %c0_6, %c0_7], %27 {strides = array<i32>} : memref<1x1x8x128xf32, #tpu.memory_space<vmem>>, vector<1x1x8x128xf32>,
    return
  }
  func.func @transform_0(%arg0: i32, %arg1: i32) -> (i32, i32) {
    %c0_i32 = arith.constant 0 : i32
    return %arg0, %arg1 : i32, i32
  }
  func.func @transform_1(%arg0: i32, %arg1: i32) -> (i32, i32) {
    %c0_i32 = arith.constant 0 : i32
    return %arg0, %arg1 : i32, i32
  }
  func.func @transform_2(%arg0: i32, %arg1: i32) -> (i32, i32) {
    %c0_i32 = arith.constant 0 : i32
    %c0_i32_0 = arith.constant 0 : i32
    %c0_i32_1 = arith.constant 0 : i32
    return %c0_i32, %c0_i32_0 : i32, i32
  }
  func.func @transform_3(%arg0: i32, %arg1: i32) -> (i32, i32, i32, i32) {
    %c0_i32 = arith.constant 0 : i32
    %c0_i32_0 = arith.constant 0 : i32
    %c0_i32_1 = arith.constant 0 : i32
    return %arg0, %arg1, %c0_i32, %c0_i32_0 : i32, i32, i32, i32
  }
}

</mosaic_0001>

<bundles_post_ra>
// kernel: tpu_custom_call.1
= control target key start
LH: loop header
LB: loop body
LE: loop exit
PB: predicated region body
PF: predicated region fallthrough
CT: control target
= control target key end

     0   :  { %8 = vsyncpa [#allocation3], 0  ;;  %s231_s0 = inlined_call_operand.hbm [shape: f32[8,256], index: 0, kind: input, shape index: {}]   ;;  %s232_s1 = inlined_call_operand.hbm [shape: f32[8,256], index: 1, kind: input, shape index: {}]   ;;  %s233_s2 = inlined_call_operand.vmem [shape: f32[8,1], index: 2, kind: input, shape index: {}]   ;;  %s234_s3 = inlined_call_operand.hbm [shape: f32[1,1,8,128], index: 3, kind: output, shape index: {}]  }
   0x1   :  { %9 = vsyncpa [#allocation6], 0 }
   0x2   :  { %10 = vsyncpa [#allocation4], 0  ;;  %s168_s12 = smov [#allocation2]   ;;  %s169_s14 = smov [#allocation5]  }
   0x3   :  { %s17_s13 = sshll.u32 %s168_s12, 4  ;;  %s27_s15 = sshll.u32 %s169_s14, 4  ;;  %s18_s13 = int_to_ptr.vmem [resolvable:$true] %s17_s13  ;;  %s28_s15 = int_to_ptr.vmem [resolvable:$true] %s27_s15 }
   0x4   :  { %s96_s18 = scalar_lea.hbm %s231_s0, 256 }
   0x5   :  { %p97_p0 = scmp.ne.s32.totalorder %s231_s0, %s96_s18  ;;  %p100_p1 = scmp.lt.u32.totalorder %s96_s18, %s231_s0 }
   0x7   :  { %p102_p2 = pnand %p100_p1, %p97_p0 }
   0x9   :  { %105 = shalt.err (!%p102_p2)
}
   0xa   :  { %s106_s23 = scalar_lea.vmem %s18_s13, 256  ;;  %p111_p4 = scmp.lt.s32.totalorder %s18_s13, %s18_s13 }
   0xb   :  { %p107_p3 = scmp.ne.s32.totalorder %s18_s13, %s106_s23  ;;  %p112_p5 = scmp.lt.s32.totalorder %s106_s23, %s106_s23 }
   0xd   :  { %p113_p6 = por %p112_p5, %p111_p4 }
   0xf   :  { %p114_p7 = pnand %p113_p6, %p107_p3 }
  0x11   :  { %117 = shalt.err (!%p114_p7)
}
  0x12   :  { %20 = dma.hbm_to_vmem [thread:$0]  %s231_s0, 256, %s18_s13, [#allocation3]  }
  0x13   :  { %s118_s28 = scalar_lea.hbm %s232_s1, 256 }
  0x14   :  { %p119_p8 = scmp.ne.s32.totalorder %s232_s1, %s118_s28  ;;  %p122_p9 = scmp.lt.u32.totalorder %s118_s28, %s232_s1 }
  0x16   :  { %p124_p10 = pnand %p122_p9, %p119_p8 }
  0x18   :  { %127 = shalt.err (!%p124_p10)
}
  0x19   :  { %s128_s6 = scalar_lea.vmem %s28_s15, 256  ;;  %p133_p12 = scmp.lt.s32.totalorder %s28_s15, %s28_s15 }
  0x1a   :  { %p129_p11 = scmp.ne.s32.totalorder %s28_s15, %s128_s6  ;;  %p134_p13 = scmp.lt.s32.totalorder %s128_s6, %s128_s6 }
  0x1c   :  { %p135_p0 = por %p134_p13, %p133_p12 }
  0x1e   :  { %p136_p1 = pnand %p135_p0, %p129_p11 }
  0x20   :  { %139 = shalt.err (!%p136_p1)
}
  0x21   :  { %30 = dma.hbm_to_vmem [thread:$0]  %s232_s1, 256, %s28_s15, [#allocation6]  }
  0x22   :  { %162 = dma.done.wait [#allocation3], 256  }
  0x23   :  { %163 = vsyncadd [#allocation3], 4294967040 }
  0x24   :  { %164 = dma.done.wait [#allocation6], 256  }
  0x25   :  { %165 = vsyncadd [#allocation6], 4294967040  ;;  %v170_v0 = vmov 0   ;;  %v53_v1 = vld [vmem:[%s233_s2] sm:$0xff]  ;;  %v44_v3 = vld [vmem:[#allocation2 + $0x8] sm:$0xff]  ;;  %s171_s1 = smov [#allocation7]  }
  0x26   :  { %95 = vset.pattern.permute.xlu0 %v170_v0  ;;  %v43_v2 = vld [vmem:[#allocation2] sm:$0xff]  ;;  %v47_v4 = vld [vmem:[#allocation5] sm:$0xff]  ;;  %v48_v5 = vld [vmem:[#allocation5 + $0x8] sm:$0xff]  ;;  %s81_s2 = sshll.u32 %s171_s1, 4  ;;  %s82_s2 = int_to_ptr.vmem [resolvable:$true] %s81_s2 }
  0x27   :  { %56 = vperm.xlu0 %95, %v53_v1   ;;  %v49_v6 = vsub.f32 %v43_v2, %v47_v4  ;;  %v50_v7 = vsub.f32 %v44_v3, %v48_v5  ;;  %s140_s10 = scalar_lea.vmem %s82_s2, 128  ;;  %p145_p3 = scmp.lt.s32.totalorder %s82_s2, %s82_s2 }
  0x28   :  { %p141_p2 = scmp.ne.s32.totalorder %s82_s2, %s140_s10  ;;  %p146_p4 = scmp.lt.s32.totalorder %s140_s10, %s140_s10 }
  0x2a   :  { %p147_p5 = por %p146_p4, %p145_p3 }
  0x2c   :  { %p148_p6 = pnand %p147_p5, %p141_p2 }
  0xa6   :  { %v57_v8 = vpop.permute.xlu0 %56 }
  0xa7   :  { %v59_v9 = vmul.f32 %v57_v8, %v49_v6  ;;  %v60_v10 = vmul.f32 %v57_v8, %v50_v7 }
  0xa9   :  { %v61_v11 = vand.u32 2147483647, %v59_v9  ;;  %v62_v12 = vand.u32 2147483647, %v60_v10 }
  0xab   :  { %v63_v13 = vmin.f32 %v61_v11, 1.0  ;;  %v64_v14 = vmin.f32 %v62_v12, 1.0  ;;  %v65_v15 = vadd.f32 %v61_v11, %v61_v11  ;;  %v66_v16 = vadd.f32 %v62_v12, %v62_v12 }
  0xad   :  { %v67_v17 = vsub.f32 %v65_v15, %v63_v13  ;;  %v68_v18 = vsub.f32 %v66_v16, %v64_v14 }
  0xaf   :  { %v69_v19 = vmul.f32 %v67_v17, %v63_v13  ;;  %v70_v20 = vmul.f32 %v68_v18, %v64_v14 }
  0xb1   :  { %v73_v21 = vadd.f32 %v70_v20, %v69_v19 }
  0xb3   :  { %74 = vst [vmem:[#allocation7] sm:$0xff] %v73_v21 }
  0xb4   :  { %151 = shalt.err (!%p148_p6)
}
  0xb5   :  { %s152_s13 = scalar_lea.hbm %s234_s3, 128 }
  0xb6   :  { %p153_p7 = scmp.ne.s32.totalorder %s234_s3, %s152_s13  ;;  %p156_p8 = scmp.lt.u32.totalorder %s152_s13, %s234_s3 }
  0xb8   :  { %p158_p9 = pnand %p156_p8, %p153_p7 }
  0xba   :  { %161 = shalt.err (!%p158_p9)
}
  0xbb   :  { %84 = dma.vmem_to_hbm [thread:$0]  %s82_s2, 128, %s234_s3, [#allocation4]  }
  0xbc   :  { %166 = dma.done.wait [#allocation4], 128  }
  0xbd   :  { %167 = vsyncadd [#allocation4], 4294967168 }
  0xbe   :  { %88 = vsyncpa [#allocation3], 1 }
  0xbf   :  { %89 = vsyncpa [#allocation6], 1 }
  0xc0   :  { %90 = vsyncpa [#allocation4], 1 }

</bundles_post_ra>
